<compile_context>
chip_gen: v7x
topology: tpu7x:2x2x1
jax: 0.10.0
libtpu: 0.0.40
codegen_flags: <defaults>
</compile_context>

<pallas_src>
import functools
import math

import jax
import jax.numpy as jnp
from jax.experimental import pallas as pl
from jax.experimental.pallas import tpu as pltpu


def merge_kernel(ne_ref, s1_ref, s2_ref, wne_ref, ws1_ref, ws2_ref, b_ref,
                 o_ref, *, H):
    """Fused (virtual concat) + dual-linear + tanh/sigmoid gate.

    ne_ref : (Bt, E)    node_embedding tile
    s1_ref : (Bt, H)    sub_tree_1 tile
    s2_ref : (Bt, H)    sub_tree_2 tile
    wne_ref: (E, 2H)    fused-weight rows for node_embedding
    ws1_ref: (H, 2H)    fused-weight rows for sub_tree_1
    ws2_ref: (H, 2H)    fused-weight rows for sub_tree_2
    b_ref  : (1, 2H)    fused bias [bm | bg]
    o_ref  : (Bt, H)
    """
    # concat([ne, s1, s2], 1) @ [Wm | Wg]  ==  sum of three row-partitioned dots.
    y = jnp.dot(ne_ref[...], wne_ref[...], preferred_element_type=jnp.float32)
    y += jnp.dot(s1_ref[...], ws1_ref[...], preferred_element_type=jnp.float32)
    y += jnp.dot(s2_ref[...], ws2_ref[...], preferred_element_type=jnp.float32)
    y += b_ref[...]

    # Column split of the fused result: [:H] -> merge (tanh), [H:] -> merge_g
    # (sigmoid).  Both transcendentals go to the EUP; the multiply is VPU work.
    h = jnp.tanh(y[:, :H])
    g = jax.nn.sigmoid(y[:, H:])
    o_ref[...] = (h * g).astype(o_ref.dtype)


def merge_forward(node_embedding, sub_tree_1, sub_tree_2, params, *, block_b=1024):
    """JAX wrapper reproducing Merge.forward (eval mode, dropout = identity)."""
    w_ne, w_s1, w_s2, b = params["w_ne"], params["w_s1"], params["w_s2"], params["b"]

    B, E = node_embedding.shape
    H = sub_tree_1.shape[1]
    assert sub_tree_1.shape == (B, H) and sub_tree_2.shape == (B, H)
    assert w_ne.shape == (E, 2 * H)
    assert w_s1.shape == (H, 2 * H) and w_s2.shape == (H, 2 * H)
    assert b.shape == (1, 2 * H)

    # Row-tile choice: whole batch in one block when small; otherwise stream
    # sublane-aligned row tiles (block_b is a multiple of 8), letting Pallas
    # mask the partial edge tile.
    if B <= block_b:
        bt = B
        grid = (1,)
    else:
        bt = block_b
        grid = (pl.cdiv(B, bt),)

    kernel = functools.partial(merge_kernel, H=H)

    out = pl.pallas_call(
        kernel,
        out_shape=jax.ShapeDtypeStruct((B, H), node_embedding.dtype),
        grid_spec=pltpu.PrefetchScalarGridSpec(
            num_scalar_prefetch=0,
            grid=grid,
            in_specs=[
                pl.BlockSpec((bt, E), lambda i: (i, 0)),          # node_embedding
                pl.BlockSpec((bt, H), lambda i: (i, 0)),          # sub_tree_1
                pl.BlockSpec((bt, H), lambda i: (i, 0)),          # sub_tree_2
                pl.BlockSpec((E, 2 * H), lambda i: (0, 0)),       # W rows for ne (resident)
                pl.BlockSpec((H, 2 * H), lambda i: (0, 0)),       # W rows for s1 (resident)
                pl.BlockSpec((H, 2 * H), lambda i: (0, 0)),       # W rows for s2 (resident)
                pl.BlockSpec((1, 2 * H), lambda i: (0, 0)),       # fused bias   (resident)
            ],
            out_specs=pl.BlockSpec((bt, H), lambda i: (i, 0)),
        ),
        compiler_params=pltpu.CompilerParams(
            # Row tiles are independent -> shard across both TensorCores on
            # v7x; harmless on single-TC v5e/v6e.
            dimension_semantics=("parallel",),
        ),
    )(node_embedding, sub_tree_1, sub_tree_2, w_ne, w_s1, w_s2, b)
    return out


def init_merge_params(key, hidden_size, embedding_size, dtype=jnp.float32):
    """Deterministic init matching nn.Linear's U(-1/sqrt(fan_in), 1/sqrt(fan_in)).

    Returns the fused weight pre-split into its three row blocks (packing done
    once at init time, never inside the kernel or the per-call wrapper):
      w_ne = [Wm | Wg][0:E, :],  w_s1 = [...][E:E+H, :],  w_s2 = [...][E+H:, :]
      b    = [bm | bg]                              (1, 2H)
    """
    d_in = 2 * hidden_size + embedding_size
    bound = 1.0 / math.sqrt(d_in)
    k1, k2, k3, k4 = jax.random.split(key, 4)
    wm = jax.random.uniform(k1, (d_in, hidden_size), dtype, -bound, bound)
    bm = jax.random.uniform(k2, (1, hidden_size), dtype, -bound, bound)
    wg = jax.random.uniform(k3, (d_in, hidden_size), dtype, -bound, bound)
    bg = jax.random.uniform(k4, (1, hidden_size), dtype, -bound, bound)
    w = jnp.concatenate([wm, wg], axis=1)   # (Din, 2H)
    b = jnp.concatenate([bm, bg], axis=1)   # (1, 2H)
    E, H = embedding_size, hidden_size
    return {
        "w_ne": w[0:E, :],
        "w_s1": w[E:E + H, :],
        "w_s2": w[E + H:E + 2 * H, :],
        "b": b,
    }


if __name__ == "__main__":
    hidden_size = 32
    embedding_size = 32
    batch = 8

    key = jax.random.PRNGKey(0)
    kp, k1, k2, k3 = jax.random.split(key, 4)

    params = init_merge_params(kp, hidden_size, embedding_size)

    node_embedding = jax.random.normal(k1, (batch, embedding_size), jnp.float32)
    sub_tree_1 = jax.random.normal(k2, (batch, hidden_size), jnp.float32)
    sub_tree_2 = jax.random.normal(k3, (batch, hidden_size), jnp.float32)

    out = merge_forward(node_embedding, sub_tree_1, sub_tree_2, params)
    out = jax.block_until_ready(out)

    # Pure-JAX reference of the original (unfused) math.
    H = hidden_size
    w_full = jnp.concatenate([params["w_ne"], params["w_s1"], params["w_s2"]], axis=0)
    wm, wg = w_full[:, :H], w_full[:, H:]
    bm, bg = params["b"][:, :H], params["b"][:, H:]
    x = jnp.concatenate([node_embedding, sub_tree_1, sub_tree_2], axis=1)
    ref = jnp.tanh(x @ wm + bm) * jax.nn.sigmoid(x @ wg + bg)

    assert out.shape == (batch, hidden_size)
    assert jnp.allclose(out, ref, atol=1e-5, rtol=1e-5)

    print("KERNEL_OK")
</pallas_src>

<mosaic_0001>
module attributes {stable_mosaic.version = 11 : i64} {
  func.func @merge_kernel(%arg0: i32, %arg1: memref<8x32xf32, #tpu.memory_space<vmem>>, %arg2: memref<8x32xf32, #tpu.memory_space<vmem>>, %arg3: memref<8x32xf32, #tpu.memory_space<vmem>>, %arg4: memref<32x64xf32, #tpu.memory_space<vmem>>, %arg5: memref<32x64xf32, #tpu.memory_space<vmem>>, %arg6: memref<32x64xf32, #tpu.memory_space<vmem>>, %arg7: memref<1x64xf32, #tpu.memory_space<vmem>>, %arg8: memref<8x32xf32, #tpu.memory_space<vmem>>) attributes {dimension_semantics = [#tpu.dimension_semantics<parallel>], iteration_bounds = array<i64: 1>, scalar_prefetch = 0 : i64, scratch_operands = 0 : i64, tpu.core_type = #tpu.core_type<tc>, window_params = [{transform_indices = @transform_0, window_bounds = array<i64: 8, 32>}, {transform_indices = @transform_1, window_bounds = array<i64: 8, 32>}, {transform_indices = @transform_2, window_bounds = array<i64: 8, 32>}, {pipeline_mode = #tpu.pipeline_mode<synchronous>, transform_indices = @transform_3, window_bounds = array<i64: 32, 64>}, {pipeline_mode = #tpu.pipeline_mode<synchronous>, transform_indices = @transform_4, window_bounds = array<i64: 32, 64>}, {pipeline_mode = #tpu.pipeline_mode<synchronous>, transform_indices = @transform_5, window_bounds = array<i64: 32, 64>}, {pipeline_mode = #tpu.pipeline_mode<synchronous>, transform_indices = @transform_6, window_bounds = array<i64: 1, 64>}, {transform_indices = @transform_7, window_bounds = array<i64: 8, 32>}]} {
    %c0 = arith.constant 0 : index
    %c0_0 = arith.constant 0 : index
    %0 = vector.load %arg1[%c0, %c0_0] : memref<8x32xf32, #tpu.memory_space<vmem>>, vector<8x32xf32>
    %c0_1 = arith.constant 0 : index
    %c0_2 = arith.constant 0 : index
    %1 = vector.load %arg4[%c0_1, %c0_2] : memref<32x64xf32, #tpu.memory_space<vmem>>, vector<32x64xf32>
    %cst = arith.constant dense<0.000000e+00> : vector<8x64xf32>
    %2 = tpu.matmul %0, %1, %cst {dimension_numbers = #tpu.dot_dimension_numbers<[1], [0], [0], [1], [0, 0, 1, 1], [], []>} : vector<8x32xf32>, vector<32x64xf32>, vector<8x64xf32> -> vector<8x64xf32>
    %c0_3 = arith.constant 0 : index
    %c0_4 = arith.constant 0 : index
    %3 = vector.load %arg2[%c0_3, %c0_4] : memref<8x32xf32, #tpu.memory_space<vmem>>, vector<8x32xf32>
    %c0_5 = arith.constant 0 : index
    %c0_6 = arith.constant 0 : index
    %4 = vector.load %arg5[%c0_5, %c0_6] : memref<32x64xf32, #tpu.memory_space<vmem>>, vector<32x64xf32>
    %cst_7 = arith.constant dense<0.000000e+00> : vector<8x64xf32>
    %5 = tpu.matmul %3, %4, %cst_7 {dimension_numbers = #tpu.dot_dimension_numbers<[1], [0], [0], [1], [0, 0, 1, 1], [], []>} : vector<8x32xf32>, vector<32x64xf32>, vector<8x64xf32> -> vector<8x64xf32>
    %6 = arith.addf %2, %5 : vector<8x64xf32>
    %c0_8 = arith.constant 0 : index
    %c0_9 = arith.constant 0 : index
    %7 = vector.load %arg3[%c0_8, %c0_9] : memref<8x32xf32, #tpu.memory_space<vmem>>, vector<8x32xf32>
    %c0_10 = arith.constant 0 : index
    %c0_11 = arith.constant 0 : index
    %8 = vector.load %arg6[%c0_10, %c0_11] : memref<32x64xf32, #tpu.memory_space<vmem>>, vector<32x64xf32>
    %cst_12 = arith.constant dense<0.000000e+00> : vector<8x64xf32>
    %9 = tpu.matmul %7, %8, %cst_12 {dimension_numbers = #tpu.dot_dimension_numbers<[1], [0], [0], [1], [0, 0, 1, 1], [], []>} : vector<8x32xf32>, vector<32x64xf32>, vector<8x64xf32> -> vector<8x64xf32>
    %10 = arith.addf %6, %9 : vector<8x64xf32>
    %c0_13 = arith.constant 0 : index
    %c0_14 = arith.constant 0 : index
    %11 = vector.load %arg7[%c0_13, %c0_14] : memref<1x64xf32, #tpu.memory_space<vmem>>, vector<1x64xf32>
    %12 = vector.broadcast %11 : vector<1x64xf32> to vector<8x64xf32>
    %13 = arith.addf %10, %12 : vector<8x64xf32>
    %14 = vector.extract_strided_slice %13 {offsets = [0, 0], sizes = [8, 32], strides = [1, 1]} : vector<8x64xf32> to vector<8x32xf32>
    %15 = math.tanh %14 : vector<8x32xf32>
    %16 = vector.extract_strided_slice %13 {offsets = [0, 32], sizes = [8, 32], strides = [1, 1]} : vector<8x64xf32> to vector<8x32xf32>
    %17 = arith.negf %16 : vector<8x32xf32>
    %18 = math.exp %17 : vector<8x32xf32>
    %cst_15 = arith.constant 1.000000e+00 : f32
    %19 = vector.broadcast %cst_15 : f32 to vector<8x32xf32>
    %20 = arith.addf %19, %18 : vector<8x32xf32>
    %21 = arith.divf %19, %20 : vector<8x32xf32>
    %22 = arith.mulf %15, %21 : vector<8x32xf32>
    %c0_16 = arith.constant 0 : index
    %c0_17 = arith.constant 0 : index
    %23 = vector.load %arg8[%c0_16, %c0_17] : memref<8x32xf32, #tpu.memory_space<vmem>>, vector<8x32xf32>
    tpu.vector_store %arg8[%c0_16, %c0_17], %22 {strides = array<i32>} : memref<8x32xf32, #tpu.memory_space<vmem>>, vector<8x32xf32>,
    return
  }
  func.func @transform_0(%arg0: i32) -> (i32, i32) {
    %c0_i32 = arith.constant 0 : i32
    %c0_i32_0 = arith.constant 0 : i32
    return %arg0, %c0_i32 : i32, i32
  }
  func.func @transform_1(%arg0: i32) -> (i32, i32) {
    %c0_i32 = arith.constant 0 : i32
    %c0_i32_0 = arith.constant 0 : i32
    return %arg0, %c0_i32 : i32, i32
  }
  func.func @transform_2(%arg0: i32) -> (i32, i32) {
    %c0_i32 = arith.constant 0 : i32
    %c0_i32_0 = arith.constant 0 : i32
    return %arg0, %c0_i32 : i32, i32
  }
  func.func @transform_3(%arg0: i32) -> (i32, i32) {
    %c0_i32 = arith.constant 0 : i32
    %c0_i32_0 = arith.constant 0 : i32
    %c0_i32_1 = arith.constant 0 : i32
    return %c0_i32, %c0_i32_0 : i32, i32
  }
  func.func @transform_4(%arg0: i32) -> (i32, i32) {
    %c0_i32 = arith.constant 0 : i32
    %c0_i32_0 = arith.constant 0 : i32
    %c0_i32_1 = arith.constant 0 : i32
    return %c0_i32, %c0_i32_0 : i32, i32
  }
  func.func @transform_5(%arg0: i32) -> (i32, i32) {
    %c0_i32 = arith.constant 0 : i32
    %c0_i32_0 = arith.constant 0 : i32
    %c0_i32_1 = arith.constant 0 : i32
    return %c0_i32, %c0_i32_0 : i32, i32
  }
  func.func @transform_6(%arg0: i32) -> (i32, i32) {
    %c0_i32 = arith.constant 0 : i32
    %c0_i32_0 = arith.constant 0 : i32
    %c0_i32_1 = arith.constant 0 : i32
    return %c0_i32, %c0_i32_0 : i32, i32
  }
  func.func @transform_7(%arg0: i32) -> (i32, i32) {
    %c0_i32 = arith.constant 0 : i32
    %c0_i32_0 = arith.constant 0 : i32
    return %arg0, %c0_i32 : i32, i32
  }
}

</mosaic_0001>

<bundles_post_ra>
// kernel: tpu_custom_call.1
= control target key start
LH: loop header
LB: loop body
LE: loop exit
PB: predicated region body
PF: predicated region fallthrough
CT: control target
= control target key end

     0   :  { %12 = vsyncpa [#allocation3], 0  ;;  %s802_s0 = inlined_call_operand.hbm [shape: f32[8,32], index: 0, kind: input, shape index: {}]   ;;  %s803_s1 = inlined_call_operand.hbm [shape: f32[8,32], index: 1, kind: input, shape index: {}]   ;;  %s804_s2 = inlined_call_operand.hbm [shape: f32[8,32], index: 2, kind: input, shape index: {}]   ;;  %s805_s3 = inlined_call_operand.hbm [shape: f32[32,64], index: 3, kind: input, shape index: {}]   ;;  %s806_s4 = inlined_call_operand.hbm [shape: f32[32,64], index: 4, kind: input, shape index: {}]   ;;  %s807_s5 = inlined_call_operand.hbm [shape: f32[32,64], index: 5, kind: input, shape index: {}]   ;;  %s808_s6 = inlined_call_operand.vmem [shape: f32[1,64], index: 6, kind: input, shape index: {}]   ;;  %s809_s7 = inlined_call_operand.hbm [shape: f32[8,32], index: 7, kind: output, shape index: {}]  }
   0x1   :  { %13 = vsyncpa [#allocation6], 0 }
   0x2   :  { %14 = vsyncpa [#allocation9], 0 }
   0x3   :  { %15 = vsyncpa [#allocation12], 0 }
   0x4   :  { %16 = vsyncpa [#allocation4], 0  ;;  %s632_s24 = smov [#allocation5]   ;;  %s633_s26 = smov [#allocation8]  }
   0x5   :  { %s33_s25 = sshll.u32 %s632_s24, 4  ;;  %s52_s27 = sshll.u32 %s633_s26, 4  ;;  %s34_s25 = int_to_ptr.vmem [resolvable:$true] %s33_s25  ;;  %s685_s27 = int_to_ptr.vmem [resolvable:$true] %s52_s27 }
   0x6   :  { %s468_s30 = scalar_lea.hbm %s803_s1, 128 }
   0x7   :  { %p469_p0 = scmp.ne.s32.totalorder %s803_s1, %s468_s30  ;;  %p472_p1 = scmp.lt.u32.totalorder %s468_s30, %s803_s1 }
   0x9   :  { %p474_p2 = pnand %p472_p1, %p469_p0 }
   0xb   :  { %477 = shalt.err (!%p474_p2)
}
   0xc   :  { %s478_s12 = scalar_lea.vmem %s34_s25, 128  ;;  %p483_p4 = scmp.lt.s32.totalorder %s34_s25, %s34_s25 }
   0xd   :  { %p479_p3 = scmp.ne.s32.totalorder %s34_s25, %s478_s12  ;;  %p484_p5 = scmp.lt.s32.totalorder %s478_s12, %s478_s12 }
   0xf   :  { %p485_p6 = por %p484_p5, %p483_p4 }
  0x11   :  { %p486_p7 = pnand %p485_p6, %p479_p3 }
  0x13   :  { %489 = shalt.err (!%p486_p7)
}
  0x14   :  { %36 = dma.hbm_to_vmem [thread:$0]  %s803_s1, 128, %s34_s25, [#allocation6]  }
  0x15   :  { %s490_s17 = scalar_lea.hbm %s805_s3, 512 }
  0x16   :  { %p491_p8 = scmp.ne.s32.totalorder %s805_s3, %s490_s17  ;;  %p494_p9 = scmp.lt.u32.totalorder %s490_s17, %s805_s3 }
  0x18   :  { %p496_p10 = pnand %p494_p9, %p491_p8 }
  0x1a   :  { %499 = shalt.err (!%p496_p10)
}
  0x1b   :  { %s500_s22 = scalar_lea.vmem %s685_s27, 512  ;;  %p505_p12 = scmp.lt.s32.totalorder %s685_s27, %s685_s27 }
  0x1c   :  { %p501_p11 = scmp.ne.s32.totalorder %s685_s27, %s500_s22  ;;  %p506_p13 = scmp.lt.s32.totalorder %s500_s22, %s500_s22 }
  0x1e   :  { %p507_p0 = por %p506_p13, %p505_p12 }
  0x20   :  { %p508_p1 = pnand %p507_p0, %p501_p11 }
  0x22   :  { %511 = shalt.err (!%p508_p1)
}
  0x23   :  { %s634_s1 = smov 128   ;;  %s635_s23 = smov 8  }
  0x24   :  { %58 = dma.hbm_to_vmem [thread:$0]  %s805_s3, 512, %s685_s27, [#allocation9], %s634_s1, %s634_s1, %s635_s23  }
  0x25   :  { %s636_s26 = smov [#allocation2]   ;;  %s637_s29 = smov [#allocation7]  }
  0x26   :  { %s23_s28 = sshll.u32 %s636_s26, 4  ;;  %s43_s30 = sshll.u32 %s637_s29, 4  ;;  %s24_s28 = int_to_ptr.vmem [resolvable:$true] %s23_s28  ;;  %s44_s30 = int_to_ptr.vmem [resolvable:$true] %s43_s30 }
  0x27   :  { %s512_s10 = scalar_lea.hbm %s802_s0, 128 }
  0x28   :  { %p513_p2 = scmp.ne.s32.totalorder %s802_s0, %s512_s10  ;;  %p516_p3 = scmp.lt.u32.totalorder %s512_s10, %s802_s0 }
  0x2a   :  { %p518_p4 = pnand %p516_p3, %p513_p2 }
  0x2c   :  { %521 = shalt.err (!%p518_p4)
}
  0x2d   :  { %s522_s3 = scalar_lea.vmem %s24_s28, 128  ;;  %p527_p6 = scmp.lt.s32.totalorder %s24_s28, %s24_s28 }
  0x2e   :  { %p523_p5 = scmp.ne.s32.totalorder %s24_s28, %s522_s3  ;;  %p528_p7 = scmp.lt.s32.totalorder %s522_s3, %s522_s3 }
  0x30   :  { %p529_p8 = por %p528_p7, %p527_p6 }
  0x32   :  { %p530_p9 = pnand %p529_p8, %p523_p5 }
  0x34   :  { %533 = shalt.err (!%p530_p9)
}
  0x35   :  { %26 = dma.hbm_to_vmem [thread:$0]  %s802_s0, 128, %s24_s28, [#allocation3]  }
  0x36   :  { %s534_s18 = scalar_lea.hbm %s804_s2, 128 }
  0x37   :  { %p535_p10 = scmp.ne.s32.totalorder %s804_s2, %s534_s18  ;;  %p538_p11 = scmp.lt.u32.totalorder %s534_s18, %s804_s2 }
  0x39   :  { %p540_p12 = pnand %p538_p11, %p535_p10 }
  0x3b   :  { %543 = shalt.err (!%p540_p12)
}
  0x3c   :  { %s544_s24 = scalar_lea.vmem %s44_s30, 128  ;;  %p549_p0 = scmp.lt.s32.totalorder %s44_s30, %s44_s30 }
  0x3d   :  { %p545_p13 = scmp.ne.s32.totalorder %s44_s30, %s544_s24  ;;  %p550_p1 = scmp.lt.s32.totalorder %s544_s24, %s544_s24 }
  0x3f   :  { %p551_p2 = por %p550_p1, %p549_p0 }
  0x41   :  { %p552_p3 = pnand %p551_p2, %p545_p13 }
  0x43   :  { %555 = shalt.err (!%p552_p3)
}
  0x44   :  { %46 = dma.hbm_to_vmem [thread:$0]  %s804_s2, 128, %s44_s30, [#allocation6]  }
  0x45   :  { %s638_s26 = smov [#allocation10]   ;;  %s639_s29 = smov [#allocation11]  }
  0x46   :  { %s64_s28 = sshll.u32 %s638_s26, 4  ;;  %s76_s8 = sshll.u32 %s639_s29, 4  ;;  %s65_s28 = int_to_ptr.vmem [resolvable:$true] %s64_s28  ;;  %s743_s8 = int_to_ptr.vmem [resolvable:$true] %s76_s8 }
  0x47   :  { %s556_s11 = scalar_lea.hbm %s806_s4, 512 }
  0x48   :  { %p557_p4 = scmp.ne.s32.totalorder %s806_s4, %s556_s11  ;;  %p560_p5 = scmp.lt.u32.totalorder %s556_s11, %s806_s4 }
  0x4a   :  { %p562_p6 = pnand %p560_p5, %p557_p4 }
  0x4c   :  { %565 = shalt.err (!%p562_p6)
}
  0x4d   :  { %s566_s2 = scalar_lea.vmem %s65_s28, 512  ;;  %p571_p8 = scmp.lt.s32.totalorder %s65_s28, %s65_s28 }
  0x4e   :  { %p567_p7 = scmp.ne.s32.totalorder %s65_s28, %s566_s2  ;;  %p572_p9 = scmp.lt.s32.totalorder %s566_s2, %s566_s2 }
  0x50   :  { %p573_p10 = por %p572_p9, %p571_p8 }
  0x52   :  { %p574_p11 = pnand %p573_p10, %p567_p7 }
  0x54   :  { %577 = shalt.err (!%p574_p11)
}
  0x55   :  { %70 = dma.hbm_to_vmem [thread:$0]  %s806_s4, 512, %s65_s28, [#allocation9], %s634_s1, %s634_s1, %s635_s23  }
  0x56   :  { %s578_s17 = scalar_lea.hbm %s807_s5, 512 }
  0x57   :  { %p579_p12 = scmp.ne.s32.totalorder %s807_s5, %s578_s17  ;;  %p582_p13 = scmp.lt.u32.totalorder %s578_s17, %s807_s5 }
  0x59   :  { %p584_p0 = pnand %p582_p13, %p579_p12 }
  0x5b   :  { %587 = shalt.err (!%p584_p0)
}
  0x5c   :  { %s588_s22 = scalar_lea.vmem %s743_s8, 512  ;;  %p593_p2 = scmp.lt.s32.totalorder %s743_s8, %s743_s8 }
  0x5d   :  { %p589_p1 = scmp.ne.s32.totalorder %s743_s8, %s588_s22  ;;  %p594_p3 = scmp.lt.s32.totalorder %s588_s22, %s588_s22 }
  0x5f   :  { %p595_p4 = por %p594_p3, %p593_p2 }
  0x61   :  { %p596_p5 = pnand %p595_p4, %p589_p1 }
  0x63   :  { %599 = shalt.err (!%p596_p5)
}
  0x64   :  { %82 = dma.hbm_to_vmem [thread:$0]  %s807_s5, 512, %s743_s8, [#allocation12], %s634_s1, %s634_s1, %s635_s23  }
  0x65   :  { %622 = dma.done.wait [#allocation3], 128  }
  0x66   :  { %623 = vsyncadd [#allocation3], 4294967168 }
  0x67   :  { %624 = dma.done.wait [#allocation6], 256  }
  0x68   :  { %625 = vsyncadd [#allocation6], 4294967040 }
  0x69   :  { %626 = dma.done.wait [#allocation9], 1024  }
  0x6a   :  { %627 = vsyncadd [#allocation9], 4294966272 }
  0x6b   :  { %628 = dma.done.wait [#allocation12], 512  }
  0x6c   :  { %629 = vsyncadd [#allocation12], 4294966784  ;;  %v640_v0 = vmov 0.0|0.0   ;;  %vm641_vm0 = vmmov 0   ;;  %v642_v1 = vmov 0.0   ;;  %v109_v2 = vld [vmem:[#allocation10] sm:$0xff] }
  0x6d   :  { %431 = vmatprep.subr.bf16.mxu0 %v640_v0  ;;  %437 = vmatprep.subr.bf16.mxu1 %v640_v0  ;;  %v110_v3 = vld [vmem:[#allocation10 + $0x8] sm:$0xff]  ;;  %v104_v4 = vld [vmem:[#allocation8] sm:$0xff]  ;;  %v111_v7 = vld [vmem:[#allocation10 + $0x10] sm:$0xff]  ;;  %vm113_vm1 = vcmask 261120   ;;  %s643_s23 = smov 96   ;;  %s644_s0 = smov [#allocation13]  }
  0x6e   :  { %406 = vmatprep.mubr.msk.f32.mxu0 %vm641_vm0, %v642_v1  ;;  %417 = vmatprep.mubr.msk.f32.mxu1 %vm641_vm0, %v642_v1  ;;  %v432_v5 = vpack.c.bf16 %v110_v3, %v109_v2  ;;  %v105_v6 = vld [vmem:[#allocation8 + $0x8] sm:$0xff]  ;;  %v112_v8 = vld [vmem:[#allocation10 + $0x18] sm:$0xff]  ;;  %v106_v10 = vld [vmem:[#allocation8 + $0x10] sm:$0xff]  ;;  %s366_s25 = sshll.u32 %s644_s0, 4  ;;  %s367_s25 = int_to_ptr.vmem [resolvable:$true] %s366_s25 }
  0x6f   :  { %v438_v9 = vpack.c.bf16 %v105_v6, %v104_v4  ;;  %v107_v11 = vld [vmem:[#allocation8 + $0x18] sm:$0xff]  ;;  %v435_v12 = vpack.c.bf16 %v112_v8, %v111_v7  ;;  %v261_v14 = vld [vmem:[#allocation11] sm:$0xff]  ;;  %v262_v15 = vld [vmem:[#allocation11 + $0x8] sm:$0xff]  ;;  %p605_p7 = scmp.lt.s32.totalorder %s367_s25, %s367_s25 }
  0x70   :  { %433 = vmatpush3.bf16.msra.mxu0 %v432_v5  ;;  %v441_v13 = vpack.c.bf16 %v107_v11, %v106_v10  ;;  %v108_v16 = vld [vmem:[#allocation5] sm:$0xff]  ;;  %v444_v17 = vpack.c.bf16 %v262_v15, %v261_v14  ;;  %v103_v18 = vld [vmem:[#allocation2] sm:$0xff]  ;;  %v264_v20 = vld [vmem:[#allocation11 + $0x18] sm:$0xff] }
  0x71   :  { %439 = vmatpush3.bf16.msra.mxu1 %v438_v9  ;;  %434 = vmatprep.subr.bf16.mxu0 %v640_v0  ;;  %v263_v19 = vld [vmem:[#allocation11 + $0x10] sm:$0xff]  ;;  %v260_v22 = vld [vmem:[#allocation7] sm:$0xff]  ;;  %v381_v29 = vld [vmem:[%s808_s6] ss:$0 sm:$0xff]  ;;  %s600_s6 = scalar_lea.vmem %s367_s25, 128 }
  0x72   :  { %440 = vmatprep.subr.bf16.mxu1 %v640_v0  ;;  %v447_v21 = vpack.c.bf16 %v264_v20, %v263_v19  ;;  %p601_p6 = scmp.ne.s32.totalorder %s367_s25, %s600_s6  ;;  %p606_p8 = scmp.lt.s32.totalorder %s600_s6, %s600_s6 }
  0x74   :  { %436 = vmatpush3.bf16.msra.mxu0 %v435_v12  ;;  %p607_p9 = por %p606_p8, %p605_p7 }
  0x75   :  { %442 = vmatpush3.bf16.msra.mxu1 %v441_v13  ;;  %443 = vmatprep.subr.bf16.mxu0 %v640_v0 }
  0x76   :  { %p608_p10 = pnand %p607_p9, %p601_p6 }
  0x77   :  { %407 = vmatmul.mubr.msk.f32.vlgmr.msra.gmra.mrb[0].mxu0 %vm113_vm1, %v108_v16 }
  0x78   :  { %418 = vmatmul.mubr.msk.f32.vlgmr.msra.gmra.mrb[0].mxu1 %vm113_vm1, %v103_v18  ;;  %445 = vmatpush3.bf16.msra.mxu0 %v444_v17 }
  0x79   :  { %446 = vmatprep.subr.bf16.mxu0 %v640_v0  ;;  %428 = vmatprep.mubr.msk.f32.mxu0 %vm641_vm0, %v642_v1 }
  0x7c   :  { %448 = vmatpush3.bf16.msra.mxu0 %v447_v21 }
  0x7f   :  { %429 = vmatmul.mubr.msk.f32.vlgmr.msra.gmra.mrb[2].mxu0 %vm113_vm1, %v260_v22 }
 0x14a   :  { %v183_v23 = vpop.f32.mrb[0].mxu0 }
 0x14b   :  { %v408_v24 = vpop.f32.mrb[1].mxu0  ;;  %v256_v25 = vpop.f32.mrb[0].mxu1 }
 0x14c   :  { %v257_v26 = vadd.f32 %v256_v25, %v183_v23  ;;  %v419_v27 = vpop.f32.mrb[1].mxu1 }
 0x152   :  { %v334_v28 = vpop.f32.mrb[2].mxu0 }
 0x153   :  { %v338_v30 = vadd.f32 %v334_v28, %v257_v26  ;;  %v430_v31 = vpop.f32.mrb[3].mxu0 }
 0x155   :  { %v346_v32 = vadd.f32 %v381_v29, %v338_v30 }
 0x157   :  { %v382_v33 = vmul.f32 -1.442695, %v346_v32 }
 0x159   :  { %462 = vpow2.f32 %v382_v33 }
 0x163   :  { %v463_v34 = vpop.eup %462 }
 0x164   :  { %v351_v35 = vadd.f32 1.0, %v463_v34 }
 0x166   :  { %464 = vrcp.f32 %v351_v35 }
 0x167   :  { %466 = vtanh.f32 %v346_v32 }
 0x170   :  { %v465_v36 = vpop.eup %464 }
 0x171   :  { %355 = vrot.lane.b32.xlu0 %v465_v36, %s643_s23  ;;  %v467_v37 = vpop.eup %466 }
 0x1e3   :  { %v356_v38 = vpop.permute.xlu0 %355 }
 0x1e4   :  { %v358_v39 = vmul.f32 %v467_v37, %v356_v38 }
 0x1e6   :  { %359 = vst.msk [vmem:[#allocation13] sm:$0xff] %vm113_vm1, %v358_v39 }
 0x1e7   :  { %611 = shalt.err (!%p608_p10)
}
 0x1e8   :  { %s612_s29 = scalar_lea.hbm %s809_s7, 128 }
 0x1e9   :  { %p613_p11 = scmp.ne.s32.totalorder %s809_s7, %s612_s29  ;;  %p616_p12 = scmp.lt.u32.totalorder %s612_s29, %s809_s7 }
 0x1eb   :  { %p618_p13 = pnand %p616_p12, %p613_p11 }
 0x1ed   :  { %621 = shalt.err (!%p618_p13)
}
 0x1ee   :  { %369 = dma.vmem_to_hbm [thread:$0]  %s367_s25, 128, %s809_s7, [#allocation4]  }
 0x1ef   :  { %630 = dma.done.wait [#allocation4], 128  }
 0x1f0   :  { %631 = vsyncadd [#allocation4], 4294967168 }
 0x1f1   :  { %373 = vsyncpa [#allocation3], 1 }
 0x1f2   :  { %374 = vsyncpa [#allocation6], 1 }
 0x1f3   :  { %375 = vsyncpa [#allocation9], 1 }
 0x1f4   :  { %376 = vsyncpa [#allocation12], 1 }
 0x1f5   :  { %377 = vsyncpa [#allocation4], 1 }

</bundles_post_ra>
